<compile_context>
chip_gen: v5e
topology: v5e:2x2
jax: 0.10.0
libtpu: 0.0.40
codegen_flags: <defaults>
</compile_context>

<pallas_src>
import jax
import jax.numpy as jnp
from jax.experimental import pallas as pl
from jax.experimental.pallas import tpu as pltpu

LN_EPS = 1e-5


# --------------------------------------------------------------------------
# Kernel
# --------------------------------------------------------------------------
def _classifier_kernel(x_ref, w_ref, b_ref, o_ref, xn_ref):
    # x_ref : (TM, D)  row tile of activations
    # w_ref : (D, TN)  class tile of the LN-affine-folded weight
    # b_ref : (1, TN)  class tile of the folded bias (f32)
    # o_ref : (TM, TN) output tile
    # xn_ref: (TM, D)  VMEM scratch caching normalized rows across class tiles
    @pl.when(pl.program_id(1) == 0)
    def _():
        x = x_ref[...].astype(jnp.float32)
        # Single-pass LayerNorm statistics: var = E[x^2] - mean^2  (f32).
        mean = jnp.mean(x, axis=-1, keepdims=True)
        ex2 = jnp.mean(x * x, axis=-1, keepdims=True)
        var = jnp.maximum(ex2 - mean * mean, 0.0)
        xn_ref[...] = ((x - mean) * jax.lax.rsqrt(var + LN_EPS)).astype(xn_ref.dtype)

    # Linear with LN affine already folded in: (TM, D) @ (D, TN) on the MXU.
    y = jnp.dot(xn_ref[...], w_ref[...], preferred_element_type=jnp.float32)
    o_ref[...] = (y + b_ref[...]).astype(o_ref.dtype)


# --------------------------------------------------------------------------
# Tiling helpers
# --------------------------------------------------------------------------
def _round_up(n, m):
    return ((n + m - 1) // m) * m


def _vmem_budget_and_limit():
    """Generation-aware VMEM budget (for tile sizing) and scoped limit."""
    cap = 0
    try:
        cap = int(pltpu.get_tpu_info().vmem_capacity_bytes)
    except Exception:
        cap = 0
    if cap <= 0:
        cap = 64 * 1024 * 1024                      # be conservative (v7x-sized)
    if cap <= 64 * 1024 * 1024:                     # v7x: 64 MiB per TensorCore
        limit = 52 * 1024 * 1024
    else:                                           # v5e / v6e: 128 MiB physical
        limit = 100 * 1024 * 1024
    budget = int(limit * 0.70)                      # headroom for Mosaic scratch
    return budget, limit


def _choose_class_tile(c_pad, d, w_bytes, budget, tn_max):
    """Largest 128-multiple divisor of c_pad, <= tn_max, fitting the budget."""
    tn_max = max(128, tn_max)
    m = c_pad // 128
    for k in range(min(m, tn_max // 128), 0, -1):
        if m % k:
            continue
        tn = 128 * k
        # Double-buffered weight tile must leave room for the row tiles; the
        # k == 1 (tn = 128) fallback always passes.
        if 2 * d * tn * w_bytes <= max(budget // 2, 2 * d * 128 * w_bytes):
            return tn
    return 128


def _choose_row_tile(n_rows, d, tn, x_bytes, w_bytes, out_bytes, xn_bytes,
                     budget, tm_max):
    """Largest row tile fitting VMEM, rebalanced to minimize padded rows."""
    fixed = 2 * d * tn * w_bytes + 2 * tn * 4           # dbl-buffered W tile + bias
    per_row = (2 * d * x_bytes                          # dbl-buffered x tile
               + 2 * tn * out_bytes                     # dbl-buffered output tile
               + d * xn_bytes                           # xn VMEM scratch
               + 2 * d * 4 + tn * 4)                    # f32 LN temps + f32 acc
    tm_fit = max(8, (max(tm_max, 8) // 8) * 8)
    while tm_fit > 8 and fixed + tm_fit * per_row > budget:
        tm_fit //= 2

    # Rebalance: split rows into (nearly) even tiles instead of padding N up
    # to a fixed tile; keep >=2 row steps on larger N so both v7x cores work.
    n_rt = max(1, pl.cdiv(n_rows, tm_fit))
    if n_rt < 2 and n_rows >= 256:
        n_rt = 2
    tm = pl.cdiv(n_rows, n_rt)
    align = 128 if tm >= 128 else 8                     # 128-multiples match MXU cadence
    tm = _round_up(tm, align)
    return max(8, min(tm, tm_fit))


# --------------------------------------------------------------------------
# Parameter folding (hoisted out of the per-call path)
# --------------------------------------------------------------------------
def fold_classifier_params(ln_gamma, ln_beta, lin_w, lin_b, *, weight_dtype=None):
    """Fold LN affine into the linear layer; pad classes to a 128 multiple.

    (xn*gamma + beta) @ W^T + b == xn @ (gamma[:,None]*W^T) + (beta @ W^T + b)

    Returns (w_eff [D, Cp], b_eff [1, Cp] f32, num_classes).
    Call once per weight set and reuse across classifier_forward calls.
    """
    C, D = lin_w.shape
    f32 = jnp.float32
    wT = lin_w.astype(f32).T                               # (D, C)
    w_eff = ln_gamma.astype(f32)[:, None] * wT             # (D, C)
    b_eff = ln_beta.astype(f32) @ wT + lin_b.astype(f32)   # (C,)

    Cp = _round_up(C, 128)                                 # lane-dense class count
    if Cp != C:
        w_eff = jnp.pad(w_eff, ((0, 0), (0, Cp - C)))
        b_eff = jnp.pad(b_eff, ((0, Cp - C),))

    if weight_dtype is None:
        weight_dtype = lin_w.dtype                         # keep bf16 weights bf16
    w_eff = w_eff.astype(weight_dtype)
    b_eff = b_eff.reshape(1, Cp).astype(f32)
    return w_eff, b_eff, C


# --------------------------------------------------------------------------
# Forward
# --------------------------------------------------------------------------
def classifier_forward(x, w_eff, b_eff, num_classes, *,
                       tile_rows=512, tile_classes=2048):
    """x: [..., D]; w_eff: [D, Cp]; b_eff: [1, Cp] (from fold_classifier_params)."""
    orig_shape = x.shape
    D = orig_shape[-1]
    Cp = w_eff.shape[1]
    x2 = x.reshape(-1, D)
    N = x2.shape[0]

    budget, vmem_limit = _vmem_budget_and_limit()
    x_bytes = jnp.dtype(x.dtype).itemsize
    w_bytes = jnp.dtype(w_eff.dtype).itemsize
    out_bytes = x_bytes
    xn_bytes = w_bytes                                  # xn stored at weight dtype

    tn = _choose_class_tile(Cp, D, w_bytes, budget, tile_classes)
    tm = _choose_row_tile(N, D, tn, x_bytes, w_bytes, out_bytes, xn_bytes,
                          budget, tile_rows)

    # Pad rows so the grid divides evenly (padded zero rows are LN-safe via eps
    # and are sliced off below).
    Np = _round_up(N, tm)
    if Np != N:
        x2 = jnp.pad(x2, ((0, Np - N), (0, 0)))

    # Class axis innermost: xn scratch is reused across class tiles, and the x
    # tile (constant block index across j) is DMA'd only once per row tile.
    grid = (Np // tm, Cp // tn)

    cost = pl.CostEstimate(
        flops=2 * Np * D * Cp,
        transcendentals=0,
        bytes_accessed=(Np * D * x_bytes + Np * Cp * out_bytes
                        + grid[0] * D * Cp * w_bytes),
    )

    out = pl.pallas_call(
        _classifier_kernel,
        out_shape=jax.ShapeDtypeStruct((Np, Cp), x.dtype),
        grid_spec=pltpu.PrefetchScalarGridSpec(
            num_scalar_prefetch=0,
            grid=grid,
            in_specs=[
                pl.BlockSpec((tm, D), lambda i, j: (i, 0)),    # x row tile
                pl.BlockSpec((D, tn), lambda i, j: (0, j)),    # folded W class tile
                pl.BlockSpec((1, tn), lambda i, j: (0, j)),    # folded bias class tile
            ],
            out_specs=pl.BlockSpec((tm, tn), lambda i, j: (i, j)),
            scratch_shapes=[pltpu.VMEM((tm, D), w_eff.dtype)],  # cached xn
        ),
        compiler_params=pltpu.CompilerParams(
            dimension_semantics=("parallel", "arbitrary"),
            vmem_limit_bytes=vmem_limit,
        ),
        cost_estimate=cost,
    )(x2, w_eff, b_eff)

    out = out[:N, :num_classes]
    return out.reshape(*orig_shape[:-1], num_classes)


# --------------------------------------------------------------------------
# Demo / correctness check
# --------------------------------------------------------------------------
if __name__ == "__main__":
    def _reference(x, g, b, w, bias):
        xm = x - jnp.mean(x, axis=-1, keepdims=True)
        xn = xm * jax.lax.rsqrt(jnp.mean(xm * xm, axis=-1, keepdims=True) + LN_EPS)
        xn = xn * g + b
        return jnp.dot(xn, w.T, precision=jax.lax.Precision.HIGHEST) + bias

    def _make_inputs(key, batch, seq, d, c):
        kx, kg, kb, kw, kbias = jax.random.split(key, 5)
        x = jax.random.normal(kx, (batch, seq, d), dtype=jnp.float32)
        g = 1.0 + 0.1 * jax.random.normal(kg, (d,), dtype=jnp.float32)
        b = 0.1 * jax.random.normal(kb, (d,), dtype=jnp.float32)
        w = jax.random.normal(kw, (c, d), dtype=jnp.float32) / jnp.sqrt(
            jnp.float32(d))
        bias = 0.01 * jax.random.normal(kbias, (c,), dtype=jnp.float32)
        return x, g, b, w, bias

    key = jax.random.PRNGKey(0)
    k1, k2 = jax.random.split(key)

    # --- Test 1: module-sized small shapes (single row/class tile) ---
    batch, seq, embedding_dim, num_classes = 2, 8, 128, 16
    x, g, b, w, bias = _make_inputs(k1, batch, seq, embedding_dim, num_classes)
    w_eff, b_eff, C = fold_classifier_params(g, b, w, bias)   # hoisted fold
    out = classifier_forward(x, w_eff, b_eff, C)
    jax.block_until_ready(out)
    ref = _reference(x, g, b, w, bias)
    assert out.shape == (batch, seq, num_classes)
    assert jnp.allclose(out, ref, atol=1e-4, rtol=1e-4), (
        float(jnp.max(jnp.abs(out - ref))))

    # --- Test 2: force multiple row AND class tiles (exercises the cached-xn
    #     pl.when(j == 0) path and the 2-D grid) at still-small shapes ---
    batch, seq, embedding_dim, num_classes = 2, 8, 64, 256
    x, g, b, w, bias = _make_inputs(k2, batch, seq, embedding_dim, num_classes)
    w_eff, b_eff, C = fold_classifier_params(g, b, w, bias)
    out = classifier_forward(x, w_eff, b_eff, C, tile_rows=8, tile_classes=128)
    jax.block_until_ready(out)
    ref = _reference(x, g, b, w, bias)
    assert out.shape == (batch, seq, num_classes)
    assert jnp.allclose(out, ref, atol=1e-4, rtol=1e-4), (
        float(jnp.max(jnp.abs(out - ref))))

    print("KERNEL_OK")
</pallas_src>

<mosaic_0001>
module attributes {stable_mosaic.version = 11 : i64} {
  func.func @_classifier_kernel(%arg0: i32, %arg1: i32, %arg2: memref<16x128xf32, #tpu.memory_space<vmem>>, %arg3: memref<128x128xf32, #tpu.memory_space<vmem>>, %arg4: memref<1x128xf32, #tpu.memory_space<vmem>>, %arg5: memref<16x128xf32, #tpu.memory_space<vmem>>, %arg6: memref<16x128xf32, #tpu.memory_space<vmem>>) attributes {dimension_semantics = [#tpu.dimension_semantics<parallel>, #tpu.dimension_semantics<arbitrary>], iteration_bounds = array<i64: 1, 1>, scalar_prefetch = 0 : i64, scratch_operands = 1 : i64, tpu.core_type = #tpu.core_type<tc>, window_params = [{transform_indices = @transform_0, window_bounds = array<i64: 16, 128>}, {transform_indices = @transform_1, window_bounds = array<i64: 128, 128>}, {transform_indices = @transform_2, window_bounds = array<i64: 1, 128>}, {transform_indices = @transform_3, window_bounds = array<i64: 16, 128>}]} {
    %c0_i32 = arith.constant 0 : i32
    %0 = arith.cmpi eq, %arg1, %c0_i32 : i32
    %1 = arith.extui %0 : i1 to i32
    %c0_i32_0 = arith.constant 0 : i32
    %2 = arith.cmpi ne, %1, %c0_i32_0 : i32
    scf.if %2 {
      %c0_8 = arith.constant 0 : index
      %c0_9 = arith.constant 0 : index
      %10 = vector.load %arg2[%c0_8, %c0_9] : memref<16x128xf32, #tpu.memory_space<vmem>>, vector<16x128xf32>
      %cst_10 = arith.constant dense<0.000000e+00> : vector<16xf32>
      %11 = vector.multi_reduction <add>, %10, %cst_10 [1] : vector<16x128xf32> to vector<16xf32>
      %12 = vector.shape_cast %11 : vector<16xf32> to vector<16x1xf32>
      %cst_11 = arith.constant 1.280000e+02 : f32
      %13 = vector.broadcast %cst_11 : f32 to vector<16x1xf32>
      %14 = arith.divf %12, %13 : vector<16x1xf32>
      %15 = arith.mulf %10, %10 : vector<16x128xf32>
      %cst_12 = arith.constant dense<0.000000e+00> : vector<16xf32>
      %16 = vector.multi_reduction <add>, %15, %cst_12 [1] : vector<16x128xf32> to vector<16xf32>
      %17 = vector.shape_cast %16 : vector<16xf32> to vector<16x1xf32>
      %cst_13 = arith.constant 1.280000e+02 : f32
      %18 = vector.broadcast %cst_13 : f32 to vector<16x1xf32>
      %19 = arith.divf %17, %18 : vector<16x1xf32>
      %20 = arith.mulf %14, %14 : vector<16x1xf32>
      %21 = arith.subf %19, %20 : vector<16x1xf32>
      %cst_14 = arith.constant 0.000000e+00 : f32
      %22 = vector.broadcast %cst_14 : f32 to vector<16x1xf32>
      %23 = arith.maximumf %21, %22 : vector<16x1xf32>
      %24 = vector.broadcast %14 : vector<16x1xf32> to vector<16x128xf32>
      %25 = arith.subf %10, %24 : vector<16x128xf32>
      %cst_15 = arith.constant 9.99999974E-6 : f32
      %26 = vector.broadcast %cst_15 : f32 to vector<16x1xf32>
      %27 = arith.addf %23, %26 : vector<16x1xf32>
      %28 = math.rsqrt %27 : vector<16x1xf32>
      %29 = vector.broadcast %28 : vector<16x1xf32> to vector<16x128xf32>
      %30 = arith.mulf %25, %29 : vector<16x128xf32>
      %c0_16 = arith.constant 0 : index
      %c0_17 = arith.constant 0 : index
      %31 = vector.load %arg6[%c0_16, %c0_17] : memref<16x128xf32, #tpu.memory_space<vmem>>, vector<16x128xf32>
      tpu.vector_store %arg6[%c0_16, %c0_17], %30 {strides = array<i32>} : memref<16x128xf32, #tpu.memory_space<vmem>>, vector<16x128xf32>,
    } else {
    }
    %c0 = arith.constant 0 : index
    %c0_1 = arith.constant 0 : index
    %3 = vector.load %arg6[%c0, %c0_1] : memref<16x128xf32, #tpu.memory_space<vmem>>, vector<16x128xf32>
    %c0_2 = arith.constant 0 : index
    %c0_3 = arith.constant 0 : index
    %4 = vector.load %arg3[%c0_2, %c0_3] : memref<128x128xf32, #tpu.memory_space<vmem>>, vector<128x128xf32>
    %cst = arith.constant dense<0.000000e+00> : vector<16x128xf32>
    %5 = tpu.matmul %3, %4, %cst {dimension_numbers = #tpu.dot_dimension_numbers<[1], [0], [0], [1], [0, 0, 1, 1], [], []>} : vector<16x128xf32>, vector<128x128xf32>, vector<16x128xf32> -> vector<16x128xf32>
    %c0_4 = arith.constant 0 : index
    %c0_5 = arith.constant 0 : index
    %6 = vector.load %arg4[%c0_4, %c0_5] : memref<1x128xf32, #tpu.memory_space<vmem>>, vector<1x128xf32>
    %7 = vector.broadcast %6 : vector<1x128xf32> to vector<16x128xf32>
    %8 = arith.addf %5, %7 : vector<16x128xf32>
    %c0_6 = arith.constant 0 : index
    %c0_7 = arith.constant 0 : index
    %9 = vector.load %arg5[%c0_6, %c0_7] : memref<16x128xf32, #tpu.memory_space<vmem>>, vector<16x128xf32>
    tpu.vector_store %arg5[%c0_6, %c0_7], %8 {strides = array<i32>} : memref<16x128xf32, #tpu.memory_space<vmem>>, vector<16x128xf32>,
    return
  }
  func.func @transform_0(%arg0: i32, %arg1: i32) -> (i32, i32) {
    %c0_i32 = arith.constant 0 : i32
    %c0_i32_0 = arith.constant 0 : i32
    return %arg0, %c0_i32 : i32, i32
  }
  func.func @transform_1(%arg0: i32, %arg1: i32) -> (i32, i32) {
    %c0_i32 = arith.constant 0 : i32
    %c0_i32_0 = arith.constant 0 : i32
    return %c0_i32, %arg1 : i32, i32
  }
  func.func @transform_2(%arg0: i32, %arg1: i32) -> (i32, i32) {
    %c0_i32 = arith.constant 0 : i32
    %c0_i32_0 = arith.constant 0 : i32
    return %c0_i32, %arg1 : i32, i32
  }
  func.func @transform_3(%arg0: i32, %arg1: i32) -> (i32, i32) {
    %c0_i32 = arith.constant 0 : i32
    return %arg0, %arg1 : i32, i32
  }
}

</mosaic_0001>

<bundles_post_ra>
// kernel: tpu_custom_call.1
= control target key start
LH: loop header
LB: loop body
LE: loop exit
PB: predicated region body
PF: predicated region fallthrough
CT: control target
= control target key end

     0   :  { %8 = vsyncpa [#allocation4], 0  ;;  %s341_s0 = inlined_call_operand.hbm [shape: f32[16,128], index: 0, kind: input, shape index: {}]   ;;  %s342_s1 = inlined_call_operand.hbm [shape: f32[128,128], index: 1, kind: input, shape index: {}]   ;;  %s343_s2 = inlined_call_operand.vmem [shape: f32[1,128], index: 2, kind: input, shape index: {}]   ;;  %s344_s3 = inlined_call_operand.hbm [shape: f32[16,128], index: 3, kind: output, shape index: {}]  }
   0x1   :  { %9 = vsyncpa [#allocation7], 0 }
   0x2   :  { %10 = vsyncpa [#allocation5], 0  ;;  %s15_s14 = sshll.u32 %s341_s0, 4  ;;  %s282_s15 = smov [#allocation3]   ;;  %s16_s14 = int_to_ptr.hbm [resolvable:$true] %s15_s14 }
   0x3   :  { %s17_s16 = sshll.u32 %s282_s15, 4  ;;  %s28_s19 = sshll.u32 %s342_s1, 4  ;;  %s18_s16 = int_to_ptr.vmem [resolvable:$true] %s17_s16  ;;  %s29_s19 = int_to_ptr.hbm [resolvable:$true] %s28_s19 }
   0x4   :  { %s283_s20 = smov 128   ;;  %s284_s21 = smov 8  }
   0x5   :  { %23 = dma.hbm_to_vmem [thread:$0]  %s16_s14, 256, %s18_s16, [#allocation4], %s283_s20, %s283_s20, %s284_s21  }
   0x6   :  { %s285_s22 = smov [#allocation6]  }
   0x7   :  { %s30_s23 = sshll.u32 %s285_s22, 4  ;;  %s31_s23 = int_to_ptr.vmem [resolvable:$true] %s30_s23 }
   0x8   :  { %36 = dma.hbm_to_vmem [thread:$0]  %s29_s19, 2048, %s31_s23, [#allocation7], %s283_s20, %s283_s20, %s284_s21  }
   0x9   :  { %276 = dma.done.wait [#allocation4], 256  }
   0xa   :  { %277 = vsyncadd [#allocation4], 4294967040 }
   0xb   :  { %278 = dma.done.wait [#allocation7], 2048  }
   0xc   :  { %279 = vsyncadd [#allocation7], 4294965248  ;;  %v320_v0 = vld [vmem:[#allocation3] sm:$0xff]  ;;  %v125_v1 = vld [vmem:[#allocation6 + $0x78] sm:$0xff]  ;;  %v286_v7 = vmov 128.0   ;;  %s287_s24 = smov [#allocation8]  }
   0xd   :  { %53 = vadd.xlane.f32.xlu0 %v320_v0  ;;  %v66_v2 = vmul.f32 %v320_v0, %v320_v0  ;;  %130 = vmatpush.msra.mxu0 %v125_v1  ;;  %v325_v3 = vld [vmem:[#allocation3 + $0x8] sm:$0xff]  ;;  %v124_v5 = vld [vmem:[#allocation6 + $0x70] sm:$0xff]  ;;  %v123_v6 = vld [vmem:[#allocation6 + $0x68] sm:$0xff]  ;;  %198 = vrcp.f32 %v286_v7  ;;  %s159_s25 = sshll.u32 %s287_s24, 4  ;;  %s161_s28 = sshll.u32 %s344_s3, 4  ;;  %s160_s25 = int_to_ptr.vmem [resolvable:$true] %s159_s25  ;;  %s162_s28 = int_to_ptr.hbm [resolvable:$true] %s161_s28 }
   0xe   :  { %175 = vmatpush.msra.mxu1 %v125_v1  ;;  %v67_v4 = vmul.f32 %v325_v3, %v325_v3  ;;  %v122_v8 = vld [vmem:[#allocation6 + $0x60] sm:$0xff]  ;;  %v121_v9 = vld [vmem:[#allocation6 + $0x58] sm:$0xff]  ;;  %v120_v10 = vld [vmem:[#allocation6 + $0x50] sm:$0xff] }
   0xf   :  { %68 = vadd.xlane.f32.xlu1 %v66_v2  ;;  %131 = vmatpush.msra.mxu0 %v124_v5  ;;  %v119_v12 = vld [vmem:[#allocation6 + $0x48] sm:$0xff]  ;;  %v118_v13 = vld [vmem:[#allocation6 + $0x40] sm:$0xff]  ;;  %v117_v15 = vld [vmem:[#allocation6 + $0x38] sm:$0xff] }
  0x10   :  { %176 = vmatpush.msra.mxu1 %v124_v5  ;;  %v116_v16 = vld [vmem:[#allocation6 + $0x30] sm:$0xff]  ;;  %v115_v18 = vld [vmem:[#allocation6 + $0x28] sm:$0xff]  ;;  %v114_v19 = vld [vmem:[#allocation6 + $0x20] sm:$0xff] }
  0x11   :  { %132 = vmatpush.msra.mxu0 %v123_v6  ;;  %v113_v21 = vld [vmem:[#allocation6 + $0x18] sm:$0xff]  ;;  %v112_v22 = vld [vmem:[#allocation6 + $0x10] sm:$0xff]  ;;  %v111_v24 = vld [vmem:[#allocation6 + $0x8] sm:$0xff] }
  0x12   :  { %177 = vmatpush.msra.mxu1 %v123_v6  ;;  %v110_v25 = vld [vmem:[#allocation6] sm:$0xff]  ;;  %v197_v61 = vld [vmem:[%s343_s2] ss:$0 sm:$0xff] }
  0x13   :  { %133 = vmatpush.msra.mxu0 %v122_v8  ;;  %v199_v11 = vpop.eup %198 }
  0x14   :  { %178 = vmatpush.msra.mxu1 %v122_v8  ;;  %v58_v14 = vmul.f32 128.0, %v199_v11  ;;  %vm62_vm0 = vweird.f32 %v199_v11 }
  0x15   :  { %55 = vadd.xlane.f32.xlu0 %v325_v3  ;;  %134 = vmatpush.msra.mxu0 %v121_v9 }
  0x16   :  { %179 = vmatpush.msra.mxu1 %v121_v9  ;;  %v59_v17 = vsub.f32 1.0, %v58_v14 }
  0x17   :  { %70 = vadd.xlane.f32.xlu1 %v67_v4  ;;  %135 = vmatpush.msra.mxu0 %v120_v10 }
  0x18   :  { %180 = vmatpush.msra.mxu1 %v120_v10  ;;  %v60_v20 = vmul.f32 %v199_v11, %v59_v17 }
  0x19   :  { %136 = vmatpush.msra.mxu0 %v119_v12 }
  0x1a   :  { %181 = vmatpush.msra.mxu1 %v119_v12  ;;  %v61_v23 = vadd.f32 %v199_v11, %v60_v20 }
  0x1b   :  { %137 = vmatpush.msra.mxu0 %v118_v13 }
  0x1c   :  { %182 = vmatpush.msra.mxu1 %v118_v13  ;;  %v63_v26 = vsel %vm62_vm0, %v199_v11, %v61_v23 }
  0x1d   :  { %138 = vmatpush.msra.mxu0 %v117_v15 }
  0x1e   :  { %183 = vmatpush.msra.mxu1 %v117_v15 }
  0x1f   :  { %139 = vmatpush.msra.mxu0 %v116_v16 }
  0x20   :  { %184 = vmatpush.msra.mxu1 %v116_v16 }
  0x21   :  { %140 = vmatpush.msra.mxu0 %v115_v18 }
  0x22   :  { %185 = vmatpush.msra.mxu1 %v115_v18 }
  0x23   :  { %141 = vmatpush.msra.mxu0 %v114_v19 }
  0x24   :  { %186 = vmatpush.msra.mxu1 %v114_v19 }
  0x25   :  { %142 = vmatpush.msra.mxu0 %v113_v21 }
  0x26   :  { %187 = vmatpush.msra.mxu1 %v113_v21 }
  0x27   :  { %143 = vmatpush.msra.mxu0 %v112_v22 }
  0x28   :  { %188 = vmatpush.msra.mxu1 %v112_v22 }
  0x29   :  { %144 = vmatpush.msra.mxu0 %v111_v24 }
  0x2a   :  { %189 = vmatpush.msra.mxu1 %v111_v24 }
  0x2b   :  { %145 = vmatpush.msra.mxu0 %v110_v25 }
  0x2c   :  { %190 = vmatpush.msra.mxu1 %v110_v25 }
  0x80   :  { %v54_v27 = vpop.xlane.xlu0 %53 }
  0x81   :  { %v64_v28 = vmul.f32 %v63_v26, %v54_v27 }
  0x82   :  { %v69_v29 = vpop.xlane.xlu1 %68 }
  0x83   :  { %v74_v30 = vmul.f32 %v64_v28, %v64_v28  ;;  %v72_v31 = vmul.f32 %v69_v29, %v63_v26  ;;  %v80_v51 = vsub.f32 %v320_v0, %v64_v28 }
  0x85   :  { %v76_v32 = vsub.f32 %v72_v31, %v74_v30 }
  0x87   :  { %v78_v33 = vmax.f32 %v76_v32, 0.0 }
  0x88   :  { %v56_v34 = vpop.xlane.xlu0 %55 }
  0x89   :  { %v82_v35 = vadd.f32 1e-05, %v78_v33  ;;  %v65_v36 = vmul.f32 %v63_v26, %v56_v34 }
  0x8a   :  { %v71_v37 = vpop.xlane.xlu1 %70 }
  0x8b   :  { %200 = vrsqrt.f32 %v82_v35  ;;  %v75_v38 = vmul.f32 %v65_v36, %v65_v36  ;;  %v73_v39 = vmul.f32 %v71_v37, %v63_v26  ;;  %vm90_vm2 = vweird.f32 %v82_v35 }
  0x8c   :  { %v81_v58 = vsub.f32 %v325_v3, %v65_v36 }
  0x8d   :  { %v77_v40 = vsub.f32 %v73_v39, %v75_v38 }
  0x8f   :  { %v79_v41 = vmax.f32 %v77_v40, 0.0 }
  0x91   :  { %v201_v42 = vpop.eup %200  ;;  %v83_v43 = vadd.f32 1e-05, %v79_v41 }
  0x92   :  { %v85_v44 = vmul.f32 %v201_v42, %v82_v35  ;;  %vm91_vm1 = vweird.f32 %v201_v42 }
  0x93   :  { %202 = vrsqrt.f32 %v83_v43  ;;  %vm92_vm3 = vmor %vm90_vm2, %vm91_vm1  ;;  %vm100_vm5 = vweird.f32 %v83_v43 }
  0x94   :  { %v86_v45 = vmul.f32 %v201_v42, %v85_v44 }
  0x96   :  { %v87_v46 = vmul.f32 0.5, %v86_v45 }
  0x98   :  { %v88_v47 = vsub.f32 1.5, %v87_v46 }
  0x99   :  { %v203_v48 = vpop.eup %202 }
  0x9a   :  { %v95_v49 = vmul.f32 %v203_v48, %v83_v43  ;;  %v89_v50 = vmul.f32 %v201_v42, %v88_v47  ;;  %vm101_vm4 = vweird.f32 %v203_v48 }
  0x9b   :  { %vm102_vm6 = vmor %vm100_vm5, %vm101_vm4 }
  0x9c   :  { %v93_v52 = vsel %vm92_vm3, %v201_v42, %v89_v50  ;;  %v96_v53 = vmul.f32 %v203_v48, %v95_v49 }
  0x9d   :  { %v104_v54 = vmul.f32 %v93_v52, %v80_v51 }
  0x9e   :  { %v97_v55 = vmul.f32 0.5, %v96_v53 }
  0x9f   :  { %146 = vmatmul.f32.vlgmr.msra.gmra.mxu0 %v104_v54 }
  0xa0   :  { %v98_v56 = vsub.f32 1.5, %v97_v55 }
  0xa2   :  { %v99_v57 = vmul.f32 %v203_v48, %v98_v56 }
  0xa4   :  { %v103_v59 = vsel %vm102_vm6, %v203_v48, %v99_v57 }
  0xa5   :  { %v105_v60 = vmul.f32 %v103_v59, %v81_v58 }
  0xa7   :  { %149 = vmatmul.f32.vlgmr.msra.gmra.mxu1 %v105_v60 }
 0x11c   :  { %v147_v62 = vpop.f32.mrf.mxu0 }
 0x11d   :  { %v148_v63 = vadd.f32 %v197_v61, %v147_v62 }
 0x11f   :  { %153 = vst [vmem:[#allocation8] sm:$0xff] %v148_v63 }
 0x124   :  { %v150_v0 = vpop.f32.mrf.mxu1 }
 0x125   :  { %v151_v1 = vadd.f32 %v197_v61, %v150_v0 }
 0x127   :  { %154 = vst [vmem:[#allocation8 + $0x8] sm:$0xff] %v151_v1 }
 0x128   :  { %167 = dma.vmem_to_hbm [thread:$0]  %s160_s25, 256, %s162_s28, [#allocation5], %s283_s20, %s283_s20, %s284_s21  }
 0x129   :  { %280 = dma.done.wait [#allocation5], 256  }
 0x12a   :  { %281 = vsyncadd [#allocation5], 4294967040 }
 0x12b   :  { %172 = vsyncpa [#allocation4], 1 }
 0x12c   :  { %173 = vsyncpa [#allocation7], 1 }
 0x12d   :  { %174 = vsyncpa [#allocation5], 1 }

</bundles_post_ra>
